<compile_context>
chip_gen: v6e
topology: v6e:2x2x1
jax: 0.10.0
libtpu: 0.0.40
codegen_flags: <defaults>
</compile_context>

<pallas_src>
import jax
import jax.numpy as jnp
from jax.experimental import pallas as pl
from jax.experimental.pallas import tpu as pltpu

HID = 128
ACTION_SPACE = 10  # 5 * 2
N_UNITS = 6        # time, buffer, viewport(l=0,1), bandwidth(l=0,1)


def actor_kernel(s_ref, wf_ref, bf_ref, w1t_ref, b1_ref, w3t_ref, b3_ref, out_ref):
    relu = lambda z: jnp.maximum(z, 0.0)

    s = s_ref[...]                               # [TB, 8] packed scalars (lanes 6..7 zero)
    tb = s.shape[0]

    # Stage 1 + fc1, fused chunk-wise.  Each chunk:
    #   chunk_j = relu(s @ wf[:, j*128:(j+1)*128] + bf[:, j*128:(j+1)*128])   (MXU, K=8)
    #   acc    += chunk_j @ w1t[j*128:(j+1)*128, :]                           (MXU, K=128)
    # Static ref slices are free; the [TB, 768] concatenation never materializes.
    acc = jnp.zeros((tb, HID), jnp.float32)
    for j in range(N_UNITS):
        c0, c1 = j * HID, (j + 1) * HID
        chunk = relu(
            jnp.dot(s, wf_ref[:, c0:c1], preferred_element_type=jnp.float32)
            + bf_ref[:, c0:c1])                                            # [TB, 128]
        acc = acc + jnp.dot(chunk, w1t_ref[c0:c1, :],
                            preferred_element_type=jnp.float32)            # [TB, 128]
    h = relu(acc + b1_ref[...])                                            # [TB, 128]

    # fc3: single [TB,128] x [128,10] dot.
    logits = (jnp.dot(h, w3t_ref[...], preferred_element_type=jnp.float32)
              + b3_ref[...])                                               # [TB, 10]

    # Grouped softmax (== x.view(-1,2,5) -> softmax(dim=2) -> view(-1,10)) via lane
    # masks: pure VPU/EUP/XLU work on the same vregs, no sub-vreg slices or concat.
    lane = jax.lax.broadcasted_iota(jnp.int32, logits.shape, 1)            # [TB, 10]
    g0 = lane < 5
    m0 = jnp.max(jnp.where(g0, logits, -jnp.inf), axis=1, keepdims=True)   # [TB, 1]
    m1 = jnp.max(jnp.where(g0, -jnp.inf, logits), axis=1, keepdims=True)   # [TB, 1]
    e = jnp.exp(logits - jnp.where(g0, m0, m1))                            # [TB, 10]
    s0 = jnp.sum(jnp.where(g0, e, 0.0), axis=1, keepdims=True)             # [TB, 1]
    s1 = jnp.sum(jnp.where(g0, 0.0, e), axis=1, keepdims=True)             # [TB, 1]
    # approx=True would use the free EUP slot but loosens the 1e-4/1e-5 parity; keep exact.
    inv = jnp.where(g0, pl.reciprocal(s0, approx=False),
                    pl.reciprocal(s1, approx=False))                       # [TB, 10]
    out_ref[...] = e * inv


def init_params(key):
    keys = jax.random.split(key, 12)

    def w(k, shape, scale=0.1):
        return (scale * jax.random.normal(k, shape)).astype(jnp.float32)

    return dict(
        fc_1_w=w(keys[0], (HID, 1)), fc_1_b=w(keys[1], (HID,)),
        fc_2_w=w(keys[2], (HID, 1)), fc_2_b=w(keys[3], (HID,)),
        conv1_w=w(keys[4], (HID, 1, 1)), conv1_b=w(keys[5], (HID,)),
        conv2_w=w(keys[6], (HID, 1, 1)), conv2_b=w(keys[7], (HID,)),
        fc1_w=w(keys[8], (HID, N_UNITS * HID)), fc1_b=w(keys[9], (HID,)),
        fc3_w=w(keys[10], (ACTION_SPACE, HID)), fc3_b=w(keys[11], (ACTION_SPACE,)),
    )


def prepare_actor_params(p):
    """One-time weight plumbing (hoisted out of the per-call path)."""
    unit_w = [
        p['fc_1_w'].reshape(HID),   # time
        p['fc_2_w'].reshape(HID),   # buffer
        p['conv1_w'].reshape(HID),  # viewport  l=0
        p['conv1_w'].reshape(HID),  # viewport  l=1
        p['conv2_w'].reshape(HID),  # bandwidth l=0
        p['conv2_w'].reshape(HID),  # bandwidth l=1
    ]
    unit_b = [p['fc_1_b'], p['fc_2_b'],
              p['conv1_b'], p['conv1_b'],
              p['conv2_b'], p['conv2_b']]

    # Block-diagonal stage-1 weight: row j carries unit j's 128-wide weight row in
    # columns j*128:(j+1)*128; rows 6..7 are zero (match the zero-padded scalar lanes).
    wf = jnp.zeros((8, N_UNITS * HID), jnp.float32)
    for j, wrow in enumerate(unit_w):
        wf = wf.at[j, j * HID:(j + 1) * HID].set(wrow.astype(jnp.float32))
    bf = jnp.concatenate(unit_b)[None, :].astype(jnp.float32)        # [1, 768]

    # De-interleave fc1 columns so the in-kernel feature order is
    # [x1, x2, x3(l=0), x3(l=1), x4(l=0), x4(l=1)] while preserving PyTorch's
    # (channel, length) flatten of the conv outputs.
    W1 = p['fc1_w']                                                  # [128, 768]
    W1c = W1[:, 2 * HID:4 * HID].reshape(HID, HID, 2)                # (out, channel, length)
    W1d = W1[:, 4 * HID:6 * HID].reshape(HID, HID, 2)
    W1_perm = jnp.concatenate(
        [W1[:, 0:HID], W1[:, HID:2 * HID],
         W1c[:, :, 0], W1c[:, :, 1], W1d[:, :, 0], W1d[:, :, 1]], axis=1)
    w1t = W1_perm.T.astype(jnp.float32)                              # [768, 128]

    return dict(
        wf=wf,                                     # [8, 768]
        bf=bf,                                     # [1, 768]
        w1t=w1t,                                   # [768, 128]
        b1=p['fc1_b'][None, :].astype(jnp.float32),   # [1, 128]
        w3t=p['fc3_w'].T.astype(jnp.float32),         # [128, 10]
        b3=p['fc3_b'][None, :].astype(jnp.float32),   # [1, 10]
    )


def actor_forward_pallas(inputs, prepped, tb=1024):
    B = inputs.shape[0]

    # Glue: slice the state tensor and pack the six scalars into one [B,8] array.
    s = jnp.stack([
        inputs[:, 0, -1],   # time
        inputs[:, 1, -1],   # buffer
        inputs[:, 2, 0],    # viewport  l=0
        inputs[:, 2, 1],    # viewport  l=1
        inputs[:, 3, 0],    # bandwidth l=0
        inputs[:, 3, 1],    # bandwidth l=1
    ], axis=1)                                                       # [B, 6]

    # Tile-size policy: big tiles (per-step HBM traffic is tiny, overhead-bound),
    # but keep >= 2 grid steps when B allows so the "parallel" batch axis can
    # shard across v7x's two TensorCores.
    b8 = ((max(B, 1) + 7) // 8) * 8
    half = (((b8 + 1) // 2 + 7) // 8) * 8
    TB = max(8, min(tb, half))
    Bp = ((b8 + TB - 1) // TB) * TB
    s = jnp.pad(s, ((0, Bp - B), (0, 2)))                            # [Bp, 8]

    out = pl.pallas_call(
        actor_kernel,
        out_shape=jax.ShapeDtypeStruct((Bp, ACTION_SPACE), jnp.float32),
        grid_spec=pltpu.PrefetchScalarGridSpec(
            num_scalar_prefetch=0,
            grid=(Bp // TB,),
            in_specs=[
                pl.BlockSpec((TB, 8), lambda i: (i, 0)),                   # packed scalars
                pl.BlockSpec((8, N_UNITS * HID), lambda i: (0, 0)),        # stage-1 block-diag W
                pl.BlockSpec((1, N_UNITS * HID), lambda i: (0, 0)),        # stage-1 biases
                pl.BlockSpec((N_UNITS * HID, HID), lambda i: (0, 0)),      # fc1 weight^T
                pl.BlockSpec((1, HID), lambda i: (0, 0)),                  # fc1 bias
                pl.BlockSpec((HID, ACTION_SPACE), lambda i: (0, 0)),       # fc3 weight^T
                pl.BlockSpec((1, ACTION_SPACE), lambda i: (0, 0)),         # fc3 bias
            ],
            out_specs=pl.BlockSpec((TB, ACTION_SPACE), lambda i: (i, 0)),
        ),
        compiler_params=pltpu.CompilerParams(dimension_semantics=("parallel",)),
    )(s, prepped['wf'], prepped['bf'], prepped['w1t'],
      prepped['b1'], prepped['w3t'], prepped['b3'])

    return out[:B]                                                    # [B, 10]


def actor_forward_ref(inputs, p):
    """Pure-JAX reference replicating the PyTorch forward exactly."""
    B = inputs.shape[0]
    relu = jax.nn.relu
    t = inputs[:, 0:1, -1]                            # [B,1]
    bf = inputs[:, 1:2, -1]                           # [B,1]
    v = inputs[:, 2:3, :2]                            # [B,1,2]
    bw = inputs[:, 3:4, :2]                           # [B,1,2]
    x1 = relu(t @ p['fc_1_w'].T + p['fc_1_b'])
    x2 = relu(bf @ p['fc_2_w'].T + p['fc_2_b'])
    x3 = relu(v * p['conv1_w'].reshape(1, HID, 1) + p['conv1_b'].reshape(1, HID, 1))
    x4 = relu(bw * p['conv2_w'].reshape(1, HID, 1) + p['conv2_b'].reshape(1, HID, 1))
    x = jnp.concatenate([x1, x2, x3.reshape(B, -1), x4.reshape(B, -1)], axis=1)
    x = relu(x @ p['fc1_w'].T + p['fc1_b'])
    x = x @ p['fc3_w'].T + p['fc3_b']
    x = jax.nn.softmax(x.reshape(B, 2, 5), axis=2)
    return x.reshape(B, ACTION_SPACE)


if __name__ == "__main__":
    key = jax.random.PRNGKey(0)
    kx, kp = jax.random.split(key)
    B, C, S = 2, 4, 8
    inputs = jax.random.normal(kx, (B, C, S), dtype=jnp.float32)
    params = init_params(kp)
    prepped = prepare_actor_params(params)

    fwd = jax.jit(actor_forward_pallas)
    out = fwd(inputs, prepped)
    out = jax.block_until_ready(out)

    ref = actor_forward_ref(inputs, params)
    assert out.shape == (B, ACTION_SPACE), out.shape
    assert jnp.allclose(out, ref, rtol=1e-4, atol=1e-5), float(jnp.max(jnp.abs(out - ref)))
    print("KERNEL_OK")
</pallas_src>

<mosaic_0001>
module attributes {stable_mosaic.version = 11 : i64} {
  func.func @actor_kernel(%arg0: i32, %arg1: memref<8x8xf32, #tpu.memory_space<vmem>>, %arg2: memref<8x768xf32, #tpu.memory_space<vmem>>, %arg3: memref<1x768xf32, #tpu.memory_space<vmem>>, %arg4: memref<768x128xf32, #tpu.memory_space<vmem>>, %arg5: memref<1x128xf32, #tpu.memory_space<vmem>>, %arg6: memref<128x10xf32, #tpu.memory_space<vmem>>, %arg7: memref<1x10xf32, #tpu.memory_space<vmem>>, %arg8: memref<8x10xf32, #tpu.memory_space<vmem>>) attributes {dimension_semantics = [#tpu.dimension_semantics<parallel>], iteration_bounds = array<i64: 1>, scalar_prefetch = 0 : i64, scratch_operands = 0 : i64, tpu.core_type = #tpu.core_type<tc>, window_params = [{transform_indices = @transform_0, window_bounds = array<i64: 8, 8>}, {pipeline_mode = #tpu.pipeline_mode<synchronous>, transform_indices = @transform_1, window_bounds = array<i64: 8, 768>}, {pipeline_mode = #tpu.pipeline_mode<synchronous>, transform_indices = @transform_2, window_bounds = array<i64: 1, 768>}, {pipeline_mode = #tpu.pipeline_mode<synchronous>, transform_indices = @transform_3, window_bounds = array<i64: 768, 128>}, {pipeline_mode = #tpu.pipeline_mode<synchronous>, transform_indices = @transform_4, window_bounds = array<i64: 1, 128>}, {pipeline_mode = #tpu.pipeline_mode<synchronous>, transform_indices = @transform_5, window_bounds = array<i64: 128, 10>}, {pipeline_mode = #tpu.pipeline_mode<synchronous>, transform_indices = @transform_6, window_bounds = array<i64: 1, 10>}, {transform_indices = @transform_7, window_bounds = array<i64: 8, 10>}]} {
    %c0 = arith.constant 0 : index
    %c0_0 = arith.constant 0 : index
    %0 = vector.load %arg1[%c0, %c0_0] : memref<8x8xf32, #tpu.memory_space<vmem>>, vector<8x8xf32>
    %cst = arith.constant 0.000000e+00 : f32
    %1 = vector.broadcast %cst : f32 to vector<8x128xf32>
    %c0_1 = arith.constant 0 : index
    %c0_2 = arith.constant 0 : index
    %2 = vector.load %arg2[%c0_1, %c0_2] : memref<8x768xf32, #tpu.memory_space<vmem>>, vector<8x128xf32>
    %cst_3 = arith.constant dense<0.000000e+00> : vector<8x128xf32>
    %3 = tpu.matmul %0, %2, %cst_3 {dimension_numbers = #tpu.dot_dimension_numbers<[1], [0], [0], [1], [0, 0, 1, 1], [], []>} : vector<8x8xf32>, vector<8x128xf32>, vector<8x128xf32> -> vector<8x128xf32>
    %c0_4 = arith.constant 0 : index
    %c0_5 = arith.constant 0 : index
    %4 = vector.load %arg3[%c0_4, %c0_5] : memref<1x768xf32, #tpu.memory_space<vmem>>, vector<1x128xf32>
    %5 = vector.broadcast %4 : vector<1x128xf32> to vector<8x128xf32>
    %6 = arith.addf %3, %5 : vector<8x128xf32>
    %cst_6 = arith.constant 0.000000e+00 : f32
    %7 = vector.broadcast %cst_6 : f32 to vector<8x128xf32>
    %8 = arith.maximumf %6, %7 : vector<8x128xf32>
    %c0_7 = arith.constant 0 : index
    %c0_8 = arith.constant 0 : index
    %9 = vector.load %arg4[%c0_7, %c0_8] : memref<768x128xf32, #tpu.memory_space<vmem>>, vector<128x128xf32>
    %cst_9 = arith.constant dense<0.000000e+00> : vector<8x128xf32>
    %10 = tpu.matmul %8, %9, %cst_9 {dimension_numbers = #tpu.dot_dimension_numbers<[1], [0], [0], [1], [0, 0, 1, 1], [], []>} : vector<8x128xf32>, vector<128x128xf32>, vector<8x128xf32> -> vector<8x128xf32>
    %11 = arith.addf %1, %10 : vector<8x128xf32>
    %c0_10 = arith.constant 0 : index
    %c128 = arith.constant 128 : index
    %12 = vector.load %arg2[%c0_10, %c128] : memref<8x768xf32, #tpu.memory_space<vmem>>, vector<8x128xf32>
    %cst_11 = arith.constant dense<0.000000e+00> : vector<8x128xf32>
    %13 = tpu.matmul %0, %12, %cst_11 {dimension_numbers = #tpu.dot_dimension_numbers<[1], [0], [0], [1], [0, 0, 1, 1], [], []>} : vector<8x8xf32>, vector<8x128xf32>, vector<8x128xf32> -> vector<8x128xf32>
    %c0_12 = arith.constant 0 : index
    %c128_13 = arith.constant 128 : index
    %14 = vector.load %arg3[%c0_12, %c128_13] : memref<1x768xf32, #tpu.memory_space<vmem>>, vector<1x128xf32>
    %15 = vector.broadcast %14 : vector<1x128xf32> to vector<8x128xf32>
    %16 = arith.addf %13, %15 : vector<8x128xf32>
    %cst_14 = arith.constant 0.000000e+00 : f32
    %17 = vector.broadcast %cst_14 : f32 to vector<8x128xf32>
    %18 = arith.maximumf %16, %17 : vector<8x128xf32>
    %c128_15 = arith.constant 128 : index
    %c0_16 = arith.constant 0 : index
    %19 = vector.load %arg4[%c128_15, %c0_16] : memref<768x128xf32, #tpu.memory_space<vmem>>, vector<128x128xf32>
    %cst_17 = arith.constant dense<0.000000e+00> : vector<8x128xf32>
    %20 = tpu.matmul %18, %19, %cst_17 {dimension_numbers = #tpu.dot_dimension_numbers<[1], [0], [0], [1], [0, 0, 1, 1], [], []>} : vector<8x128xf32>, vector<128x128xf32>, vector<8x128xf32> -> vector<8x128xf32>
    %21 = arith.addf %11, %20 : vector<8x128xf32>
    %c0_18 = arith.constant 0 : index
    %c256 = arith.constant 256 : index
    %22 = vector.load %arg2[%c0_18, %c256] : memref<8x768xf32, #tpu.memory_space<vmem>>, vector<8x128xf32>
    %cst_19 = arith.constant dense<0.000000e+00> : vector<8x128xf32>
    %23 = tpu.matmul %0, %22, %cst_19 {dimension_numbers = #tpu.dot_dimension_numbers<[1], [0], [0], [1], [0, 0, 1, 1], [], []>} : vector<8x8xf32>, vector<8x128xf32>, vector<8x128xf32> -> vector<8x128xf32>
    %c0_20 = arith.constant 0 : index
    %c256_21 = arith.constant 256 : index
    %24 = vector.load %arg3[%c0_20, %c256_21] : memref<1x768xf32, #tpu.memory_space<vmem>>, vector<1x128xf32>
    %25 = vector.broadcast %24 : vector<1x128xf32> to vector<8x128xf32>
    %26 = arith.addf %23, %25 : vector<8x128xf32>
    %cst_22 = arith.constant 0.000000e+00 : f32
    %27 = vector.broadcast %cst_22 : f32 to vector<8x128xf32>
    %28 = arith.maximumf %26, %27 : vector<8x128xf32>
    %c256_23 = arith.constant 256 : index
    %c0_24 = arith.constant 0 : index
    %29 = vector.load %arg4[%c256_23, %c0_24] : memref<768x128xf32, #tpu.memory_space<vmem>>, vector<128x128xf32>
    %cst_25 = arith.constant dense<0.000000e+00> : vector<8x128xf32>
    %30 = tpu.matmul %28, %29, %cst_25 {dimension_numbers = #tpu.dot_dimension_numbers<[1], [0], [0], [1], [0, 0, 1, 1], [], []>} : vector<8x128xf32>, vector<128x128xf32>, vector<8x128xf32> -> vector<8x128xf32>
    %31 = arith.addf %21, %30 : vector<8x128xf32>
    %c0_26 = arith.constant 0 : index
    %c384 = arith.constant 384 : index
    %32 = vector.load %arg2[%c0_26, %c384] : memref<8x768xf32, #tpu.memory_space<vmem>>, vector<8x128xf32>
    %cst_27 = arith.constant dense<0.000000e+00> : vector<8x128xf32>
    %33 = tpu.matmul %0, %32, %cst_27 {dimension_numbers = #tpu.dot_dimension_numbers<[1], [0], [0], [1], [0, 0, 1, 1], [], []>} : vector<8x8xf32>, vector<8x128xf32>, vector<8x128xf32> -> vector<8x128xf32>
    %c0_28 = arith.constant 0 : index
    %c384_29 = arith.constant 384 : index
    %34 = vector.load %arg3[%c0_28, %c384_29] : memref<1x768xf32, #tpu.memory_space<vmem>>, vector<1x128xf32>
    %35 = vector.broadcast %34 : vector<1x128xf32> to vector<8x128xf32>
    %36 = arith.addf %33, %35 : vector<8x128xf32>
    %cst_30 = arith.constant 0.000000e+00 : f32
    %37 = vector.broadcast %cst_30 : f32 to vector<8x128xf32>
    %38 = arith.maximumf %36, %37 : vector<8x128xf32>
    %c384_31 = arith.constant 384 : index
    %c0_32 = arith.constant 0 : index
    %39 = vector.load %arg4[%c384_31, %c0_32] : memref<768x128xf32, #tpu.memory_space<vmem>>, vector<128x128xf32>
    %cst_33 = arith.constant dense<0.000000e+00> : vector<8x128xf32>
    %40 = tpu.matmul %38, %39, %cst_33 {dimension_numbers = #tpu.dot_dimension_numbers<[1], [0], [0], [1], [0, 0, 1, 1], [], []>} : vector<8x128xf32>, vector<128x128xf32>, vector<8x128xf32> -> vector<8x128xf32>
    %41 = arith.addf %31, %40 : vector<8x128xf32>
    %c0_34 = arith.constant 0 : index
    %c512 = arith.constant 512 : index
    %42 = vector.load %arg2[%c0_34, %c512] : memref<8x768xf32, #tpu.memory_space<vmem>>, vector<8x128xf32>
    %cst_35 = arith.constant dense<0.000000e+00> : vector<8x128xf32>
    %43 = tpu.matmul %0, %42, %cst_35 {dimension_numbers = #tpu.dot_dimension_numbers<[1], [0], [0], [1], [0, 0, 1, 1], [], []>} : vector<8x8xf32>, vector<8x128xf32>, vector<8x128xf32> -> vector<8x128xf32>
    %c0_36 = arith.constant 0 : index
    %c512_37 = arith.constant 512 : index
    %44 = vector.load %arg3[%c0_36, %c512_37] : memref<1x768xf32, #tpu.memory_space<vmem>>, vector<1x128xf32>
    %45 = vector.broadcast %44 : vector<1x128xf32> to vector<8x128xf32>
    %46 = arith.addf %43, %45 : vector<8x128xf32>
    %cst_38 = arith.constant 0.000000e+00 : f32
    %47 = vector.broadcast %cst_38 : f32 to vector<8x128xf32>
    %48 = arith.maximumf %46, %47 : vector<8x128xf32>
    %c512_39 = arith.constant 512 : index
    %c0_40 = arith.constant 0 : index
    %49 = vector.load %arg4[%c512_39, %c0_40] : memref<768x128xf32, #tpu.memory_space<vmem>>, vector<128x128xf32>
    %cst_41 = arith.constant dense<0.000000e+00> : vector<8x128xf32>
    %50 = tpu.matmul %48, %49, %cst_41 {dimension_numbers = #tpu.dot_dimension_numbers<[1], [0], [0], [1], [0, 0, 1, 1], [], []>} : vector<8x128xf32>, vector<128x128xf32>, vector<8x128xf32> -> vector<8x128xf32>
    %51 = arith.addf %41, %50 : vector<8x128xf32>
    %c0_42 = arith.constant 0 : index
    %c640 = arith.constant 640 : index
    %52 = vector.load %arg2[%c0_42, %c640] : memref<8x768xf32, #tpu.memory_space<vmem>>, vector<8x128xf32>
    %cst_43 = arith.constant dense<0.000000e+00> : vector<8x128xf32>
    %53 = tpu.matmul %0, %52, %cst_43 {dimension_numbers = #tpu.dot_dimension_numbers<[1], [0], [0], [1], [0, 0, 1, 1], [], []>} : vector<8x8xf32>, vector<8x128xf32>, vector<8x128xf32> -> vector<8x128xf32>
    %c0_44 = arith.constant 0 : index
    %c640_45 = arith.constant 640 : index
    %54 = vector.load %arg3[%c0_44, %c640_45] : memref<1x768xf32, #tpu.memory_space<vmem>>, vector<1x128xf32>
    %55 = vector.broadcast %54 : vector<1x128xf32> to vector<8x128xf32>
    %56 = arith.addf %53, %55 : vector<8x128xf32>
    %cst_46 = arith.constant 0.000000e+00 : f32
    %57 = vector.broadcast %cst_46 : f32 to vector<8x128xf32>
    %58 = arith.maximumf %56, %57 : vector<8x128xf32>
    %c640_47 = arith.constant 640 : index
    %c0_48 = arith.constant 0 : index
    %59 = vector.load %arg4[%c640_47, %c0_48] : memref<768x128xf32, #tpu.memory_space<vmem>>, vector<128x128xf32>
    %cst_49 = arith.constant dense<0.000000e+00> : vector<8x128xf32>
    %60 = tpu.matmul %58, %59, %cst_49 {dimension_numbers = #tpu.dot_dimension_numbers<[1], [0], [0], [1], [0, 0, 1, 1], [], []>} : vector<8x128xf32>, vector<128x128xf32>, vector<8x128xf32> -> vector<8x128xf32>
    %61 = arith.addf %51, %60 : vector<8x128xf32>
    %c0_50 = arith.constant 0 : index
    %c0_51 = arith.constant 0 : index
    %62 = vector.load %arg5[%c0_50, %c0_51] : memref<1x128xf32, #tpu.memory_space<vmem>>, vector<1x128xf32>
    %63 = vector.broadcast %62 : vector<1x128xf32> to vector<8x128xf32>
    %64 = arith.addf %61, %63 : vector<8x128xf32>
    %cst_52 = arith.constant 0.000000e+00 : f32
    %65 = vector.broadcast %cst_52 : f32 to vector<8x128xf32>
    %66 = arith.maximumf %64, %65 : vector<8x128xf32>
    %c0_53 = arith.constant 0 : index
    %c0_54 = arith.constant 0 : index
    %67 = vector.load %arg6[%c0_53, %c0_54] : memref<128x10xf32, #tpu.memory_space<vmem>>, vector<128x10xf32>
    %cst_55 = arith.constant dense<0.000000e+00> : vector<8x10xf32>
    %68 = tpu.matmul %66, %67, %cst_55 {dimension_numbers = #tpu.dot_dimension_numbers<[1], [0], [0], [1], [0, 0, 1, 1], [], []>} : vector<8x128xf32>, vector<128x10xf32>, vector<8x10xf32> -> vector<8x10xf32>
    %c0_56 = arith.constant 0 : index
    %c0_57 = arith.constant 0 : index
    %69 = vector.load %arg7[%c0_56, %c0_57] : memref<1x10xf32, #tpu.memory_space<vmem>>, vector<1x10xf32>
    %70 = vector.broadcast %69 : vector<1x10xf32> to vector<8x10xf32>
    %71 = arith.addf %68, %70 : vector<8x10xf32>
    %72 = tpu.iota {dimensions = array<i32: 1>} : vector<8x10xi32>
    %c5_i32 = arith.constant 5 : i32
    %73 = vector.broadcast %c5_i32 : i32 to vector<8x10xi32>
    %74 = arith.cmpi slt, %72, %73 : vector<8x10xi32>
    %cst_58 = arith.constant 0xFF800000 : f32
    %75 = vector.broadcast %cst_58 : f32 to vector<8x10xf32>
    %76 = arith.select %74, %71, %75 : vector<8x10xi1>, vector<8x10xf32>
    %cst_59 = arith.constant dense<0xFF800000> : vector<8xf32>
    %77 = vector.multi_reduction <maximumf>, %76, %cst_59 [1] : vector<8x10xf32> to vector<8xf32>
    %78 = vector.shape_cast %77 : vector<8xf32> to vector<8x1xf32>
    %cst_60 = arith.constant 0xFF800000 : f32
    %79 = vector.broadcast %cst_60 : f32 to vector<8x10xf32>
    %80 = arith.select %74, %79, %71 : vector<8x10xi1>, vector<8x10xf32>
    %cst_61 = arith.constant dense<0xFF800000> : vector<8xf32>
    %81 = vector.multi_reduction <maximumf>, %80, %cst_61 [1] : vector<8x10xf32> to vector<8xf32>
    %82 = vector.shape_cast %81 : vector<8xf32> to vector<8x1xf32>
    %83 = vector.shape_cast %78 : vector<8x1xf32> to vector<8x1xf32>
    %84 = vector.broadcast %83 : vector<8x1xf32> to vector<8x10xf32>
    %85 = vector.shape_cast %82 : vector<8x1xf32> to vector<8x1xf32>
    %86 = vector.broadcast %85 : vector<8x1xf32> to vector<8x10xf32>
    %87 = arith.select %74, %84, %86 : vector<8x10xi1>, vector<8x10xf32>
    %88 = arith.subf %71, %87 : vector<8x10xf32>
    %89 = math.exp %88 : vector<8x10xf32>
    %cst_62 = arith.constant 0.000000e+00 : f32
    %90 = vector.broadcast %cst_62 : f32 to vector<8x10xf32>
    %91 = arith.select %74, %89, %90 : vector<8x10xi1>, vector<8x10xf32>
    %cst_63 = arith.constant dense<0.000000e+00> : vector<8xf32>
    %92 = vector.multi_reduction <add>, %91, %cst_63 [1] : vector<8x10xf32> to vector<8xf32>
    %93 = vector.shape_cast %92 : vector<8xf32> to vector<8x1xf32>
    %cst_64 = arith.constant 0.000000e+00 : f32
    %94 = vector.broadcast %cst_64 : f32 to vector<8x10xf32>
    %95 = arith.select %74, %94, %89 : vector<8x10xi1>, vector<8x10xf32>
    %cst_65 = arith.constant dense<0.000000e+00> : vector<8xf32>
    %96 = vector.multi_reduction <add>, %95, %cst_65 [1] : vector<8x10xf32> to vector<8xf32>
    %97 = vector.shape_cast %96 : vector<8xf32> to vector<8x1xf32>
    %98 = tpu.reciprocal %93 : vector<8x1xf32> -> vector<8x1xf32>
    %99 = tpu.reciprocal %97 : vector<8x1xf32> -> vector<8x1xf32>
    %100 = vector.shape_cast %98 : vector<8x1xf32> to vector<8x1xf32>
    %101 = vector.broadcast %100 : vector<8x1xf32> to vector<8x10xf32>
    %102 = vector.shape_cast %99 : vector<8x1xf32> to vector<8x1xf32>
    %103 = vector.broadcast %102 : vector<8x1xf32> to vector<8x10xf32>
    %104 = arith.select %74, %101, %103 : vector<8x10xi1>, vector<8x10xf32>
    %105 = arith.mulf %89, %104 : vector<8x10xf32>
    %c0_66 = arith.constant 0 : index
    %c0_67 = arith.constant 0 : index
    %106 = vector.load %arg8[%c0_66, %c0_67] : memref<8x10xf32, #tpu.memory_space<vmem>>, vector<8x10xf32>
    tpu.vector_store %arg8[%c0_66, %c0_67], %105 {strides = array<i32>} : memref<8x10xf32, #tpu.memory_space<vmem>>, vector<8x10xf32>,
    return
  }
  func.func @transform_0(%arg0: i32) -> (i32, i32) {
    %c0_i32 = arith.constant 0 : i32
    %c0_i32_0 = arith.constant 0 : i32
    return %arg0, %c0_i32 : i32, i32
  }
  func.func @transform_1(%arg0: i32) -> (i32, i32) {
    %c0_i32 = arith.constant 0 : i32
    %c0_i32_0 = arith.constant 0 : i32
    %c0_i32_1 = arith.constant 0 : i32
    return %c0_i32, %c0_i32_0 : i32, i32
  }
  func.func @transform_2(%arg0: i32) -> (i32, i32) {
    %c0_i32 = arith.constant 0 : i32
    %c0_i32_0 = arith.constant 0 : i32
    %c0_i32_1 = arith.constant 0 : i32
    return %c0_i32, %c0_i32_0 : i32, i32
  }
  func.func @transform_3(%arg0: i32) -> (i32, i32) {
    %c0_i32 = arith.constant 0 : i32
    %c0_i32_0 = arith.constant 0 : i32
    %c0_i32_1 = arith.constant 0 : i32
    return %c0_i32, %c0_i32_0 : i32, i32
  }
  func.func @transform_4(%arg0: i32) -> (i32, i32) {
    %c0_i32 = arith.constant 0 : i32
    %c0_i32_0 = arith.constant 0 : i32
    %c0_i32_1 = arith.constant 0 : i32
    return %c0_i32, %c0_i32_0 : i32, i32
  }
  func.func @transform_5(%arg0: i32) -> (i32, i32) {
    %c0_i32 = arith.constant 0 : i32
    %c0_i32_0 = arith.constant 0 : i32
    %c0_i32_1 = arith.constant 0 : i32
    return %c0_i32, %c0_i32_0 : i32, i32
  }
  func.func @transform_6(%arg0: i32) -> (i32, i32) {
    %c0_i32 = arith.constant 0 : i32
    %c0_i32_0 = arith.constant 0 : i32
    %c0_i32_1 = arith.constant 0 : i32
    return %c0_i32, %c0_i32_0 : i32, i32
  }
  func.func @transform_7(%arg0: i32) -> (i32, i32) {
    %c0_i32 = arith.constant 0 : i32
    %c0_i32_0 = arith.constant 0 : i32
    return %arg0, %c0_i32 : i32, i32
  }
}

</mosaic_0001>

<bundles_post_ra>
// kernel: actor_forward_pallas.1
= control target key start
LH: loop header
LB: loop body
LE: loop exit
PB: predicated region body
PF: predicated region fallthrough
CT: control target
= control target key end

     0   :  { %12 = vsyncpa [#allocation3], 0  ;;  %s1628_s24 = smov [#allocation2]   ;;  %s1947_s0 = inlined_call_operand.vmem [shape: f32[8,8], index: 0, kind: input, shape index: {}]   ;;  %s1948_s1 = inlined_call_operand.vmem [shape: f32[8,768], index: 1, kind: input, shape index: {}]   ;;  %s1949_s2 = inlined_call_operand.vmem [shape: f32[1,768], index: 2, kind: input, shape index: {}]   ;;  %s1950_s3 = inlined_call_operand.hbm [shape: f32[768,128], index: 3, kind: input, shape index: {}]   ;;  %s1951_s4 = inlined_call_operand.vmem [shape: f32[1,128], index: 4, kind: input, shape index: {}]   ;;  %s1952_s5 = inlined_call_operand.vmem [shape: f32[128,10], index: 5, kind: input, shape index: {}]   ;;  %s1953_s6 = inlined_call_operand.vmem [shape: f32[1,10], index: 6, kind: input, shape index: {}]   ;;  %s1954_s7 = inlined_call_operand.vmem [shape: f32[8,10], index: 7, kind: output, shape index: {}]  }
   0x1   :  { %s24_s25 = sshll.u32 %s1628_s24, 4  ;;  %s25_s25 = int_to_ptr.vmem [resolvable:$true] %s24_s25 }
   0x2   :  { %s1614_s26 = scalar_lea.vmem %s25_s25, 12288  ;;  %p1619_p1 = scmp.lt.s32.totalorder %s25_s25, %s25_s25 }
   0x3   :  { %p1615_p0 = scmp.ne.s32.totalorder %s25_s25, %s1614_s26  ;;  %p1620_p2 = scmp.lt.s32.totalorder %s1614_s26, %s1614_s26 }
   0x5   :  { %p1621_p3 = por %p1620_p2, %p1619_p1 }
   0x7   :  { %p1622_p4 = pnand %p1621_p3, %p1615_p0 }
   0x9   :  { %1625 = shalt.err (!%p1622_p4)
}
   0xa   :  { %s1629_s27 = smov 128   ;;  %s1630_s28 = smov 8  }
   0xb   :  { %30 = dma.hbm_to_vmem [thread:$0]  %s1950_s3, 12288, %s25_s25, [#allocation3], %s1629_s27, %s1629_s27, %s1630_s28  }
   0xc   :  { %1626 = dma.done.wait [#allocation3], 12288  }
   0xd   :  { %1627 = vsyncadd [#allocation3], 4294955008  ;;  %v1631_v0 = vmov 0.0   ;;  %vm1632_vm0 = vmmov 0   ;;  %vm49_vm1 = vcmask 64512   ;;  %v41_v1 = vld [vmem:[%s1948_s1] sm:$0xff] }
   0xe   :  { %1320 = vmatprep.subr.mxu0 %v1631_v0  ;;  %1322 = vmatprep.mubr.msk.f32.mxu0 %vm1632_vm0, %v1631_v0  ;;  %v1688_v2 = vld [vmem:[%s1947_s0] sm:$0xff]  ;;  %v140_v3 = vld [vmem:[%s1948_s1 + $0x8] sm:$0xff]  ;;  %v139_v4 = vld [vmem:[#allocation2 + $0x78] sm:$0xff]  ;;  %vm1145_vm3 = vcmask 80896  }
   0xf   :  { %1365 = vmatprep.subr.mxu1 %v1631_v0  ;;  %1397 = vmatprep.mubr.msk.f32.mxu1 %vm1632_vm0, %v1631_v0  ;;  %v138_v5 = vld [vmem:[#allocation2 + $0x70] sm:$0xff]  ;;  %v234_v6 = vld [vmem:[#allocation2 + $0xf8] sm:$0xff]  ;;  %v137_v7 = vld [vmem:[#allocation2 + $0x68] sm:$0xff] }
  0x10   :  { %1321 = vmatpush3.msra.mxu0 %v41_v1  ;;  %1366 = vmatpush3.msra.mxu1 %v139_v4  ;;  %v233_v8 = vld [vmem:[#allocation2 + $0xf0] sm:$0xff]  ;;  %v136_v9 = vld [vmem:[#allocation2 + $0x60] sm:$0xff]  ;;  %v232_v10 = vld [vmem:[#allocation2 + $0xe8] sm:$0xff] }
  0x11   :  { %1323 = vmatmul.mubr.msk.f32.vlgmr.msra.gmra.mxu0 %vm49_vm1, %v1688_v2  ;;  %1325 = vmatprep.subr.mxu0 %v1631_v0  ;;  %v135_v11 = vld [vmem:[#allocation2 + $0x58] sm:$0xff]  ;;  %v231_v12 = vld [vmem:[#allocation2 + $0xe0] sm:$0xff]  ;;  %v134_v13 = vld [vmem:[#allocation2 + $0x50] sm:$0xff] }
  0x12   :  { %1326 = vmatpush3.msra.mxu0 %v140_v3  ;;  %1327 = vmatprep.mubr.msk.f32.mxu0 %vm1632_vm0, %v1631_v0  ;;  %v230_v14 = vld [vmem:[#allocation2 + $0xd8] sm:$0xff]  ;;  %v133_v15 = vld [vmem:[#allocation2 + $0x48] sm:$0xff]  ;;  %v229_v16 = vld [vmem:[#allocation2 + $0xd0] sm:$0xff] }
  0x13   :  { %1330 = vmatprep.subr.mxu0 %v1631_v0  ;;  %1367 = vmatprep.subr.mxu1 %v1631_v0  ;;  %v132_v17 = vld [vmem:[#allocation2 + $0x40] sm:$0xff]  ;;  %v228_v18 = vld [vmem:[#allocation2 + $0xc8] sm:$0xff]  ;;  %v131_v19 = vld [vmem:[#allocation2 + $0x38] sm:$0xff] }
  0x14   :  { %1368 = vmatpush3.msra.mxu1 %v138_v5  ;;  %v227_v20 = vld [vmem:[#allocation2 + $0xc0] sm:$0xff]  ;;  %v130_v21 = vld [vmem:[#allocation2 + $0x30] sm:$0xff]  ;;  %v226_v22 = vld [vmem:[#allocation2 + $0xb8] sm:$0xff] }
  0x15   :  { %1328 = vmatmul.mubr.msk.f32.vlgmr.msra.gmra.mxu0 %vm49_vm1, %v1688_v2  ;;  %1369 = vmatprep.subr.mxu1 %v1631_v0  ;;  %v129_v23 = vld [vmem:[#allocation2 + $0x28] sm:$0xff]  ;;  %v225_v24 = vld [vmem:[#allocation2 + $0xb0] sm:$0xff]  ;;  %v128_v25 = vld [vmem:[#allocation2 + $0x20] sm:$0xff] }
  0x16   :  { %1331 = vmatpush3.msra.mxu0 %v234_v6  ;;  %1370 = vmatpush3.msra.mxu1 %v137_v7  ;;  %v224_v26 = vld [vmem:[#allocation2 + $0xa8] sm:$0xff]  ;;  %v127_v27 = vld [vmem:[#allocation2 + $0x18] sm:$0xff]  ;;  %v223_v28 = vld [vmem:[#allocation2 + $0xa0] sm:$0xff] }
  0x17   :  { %1332 = vmatprep.subr.mxu0 %v1631_v0  ;;  %1371 = vmatprep.subr.mxu1 %v1631_v0  ;;  %v126_v29 = vld [vmem:[#allocation2 + $0x10] sm:$0xff]  ;;  %v222_v30 = vld [vmem:[#allocation2 + $0x98] sm:$0xff]  ;;  %v125_v31 = vld [vmem:[#allocation2 + $0x8] sm:$0xff] }
  0x18   :  { %1333 = vmatpush3.msra.mxu0 %v233_v8  ;;  %1372 = vmatpush3.msra.mxu1 %v136_v9  ;;  %v221_v32 = vld [vmem:[#allocation2 + $0x90] sm:$0xff]  ;;  %v124_v33 = vld [vmem:[#allocation2] sm:$0xff]  ;;  %v220_v34 = vld [vmem:[#allocation2 + $0x88] sm:$0xff] }
  0x19   :  { %1334 = vmatprep.subr.mxu0 %v1631_v0  ;;  %1373 = vmatprep.subr.mxu1 %v1631_v0  ;;  %v219_v35 = vld [vmem:[#allocation2 + $0x80] sm:$0xff]  ;;  %v469_v42 = vld [vmem:[#allocation2 + $0x178] sm:$0xff]  ;;  %v468_v45 = vld [vmem:[#allocation2 + $0x170] sm:$0xff] }
  0x1a   :  { %1335 = vmatpush3.msra.mxu0 %v232_v10  ;;  %1374 = vmatpush3.msra.mxu1 %v135_v11  ;;  %v1175_v36 = vld [vmem:[%s1949_s2] ss:$0 sm:$0xff]  ;;  %v1177_v40 = vld [vmem:[%s1949_s2 + $0x1] ss:$0 sm:$0xff]  ;;  %v375_v48 = vld [vmem:[%s1948_s1 + $0x10] sm:$0xff] }
  0x1b   :  { %1336 = vmatprep.subr.mxu0 %v1631_v0  ;;  %1375 = vmatprep.subr.mxu1 %v1631_v0  ;;  %v467_v49 = vld [vmem:[#allocation2 + $0x168] sm:$0xff]  ;;  %v466_v50 = vld [vmem:[#allocation2 + $0x160] sm:$0xff]  ;;  %v541_v51 = vld [vmem:[%s1948_s1 + $0x18] sm:$0xff] }
  0x1c   :  { %1337 = vmatpush3.msra.mxu0 %v231_v12  ;;  %1376 = vmatpush3.msra.mxu1 %v134_v13  ;;  %v465_v52 = vld [vmem:[#allocation2 + $0x158] sm:$0xff]  ;;  %v464_v54 = vld [vmem:[#allocation2 + $0x150] sm:$0xff]  ;;  %v463_v56 = vld [vmem:[#allocation2 + $0x148] sm:$0xff] }
  0x1d   :  { %1338 = vmatprep.subr.mxu0 %v1631_v0  ;;  %1377 = vmatprep.subr.mxu1 %v1631_v0  ;;  %v635_v53 = vld [vmem:[#allocation2 + $0x1f8] sm:$0xff]  ;;  %v634_v55 = vld [vmem:[#allocation2 + $0x1f0] sm:$0xff]  ;;  %v633_v57 = vld [vmem:[#allocation2 + $0x1e8] sm:$0xff] }
  0x1e   :  { %1339 = vmatpush3.msra.mxu0 %v230_v14  ;;  %1378 = vmatpush3.msra.mxu1 %v133_v15  ;;  %v462_v58 = vld [vmem:[#allocation2 + $0x140] sm:$0xff]  ;;  %v461_v60 = vld [vmem:[#allocation2 + $0x138] sm:$0xff]  ;;  %v630_v62 = vld [vmem:[#allocation2 + $0x1d0] sm:$0xff] }
  0x1f   :  { %1340 = vmatprep.subr.mxu0 %v1631_v0  ;;  %1379 = vmatprep.subr.mxu1 %v1631_v0  ;;  %v632_v59 = vld [vmem:[#allocation2 + $0x1e0] sm:$0xff]  ;;  %v631_v61 = vld [vmem:[#allocation2 + $0x1d8] sm:$0xff]  ;;  %v629_v63 = vld [vmem:[#allocation2 + $0x1c8] sm:$0xff] }
  0x20   :  { %1341 = vmatpush3.msra.mxu0 %v229_v16  ;;  %1380 = vmatpush3.msra.mxu1 %v132_v17  ;;  %v460_v1 = vld [vmem:[#allocation2 + $0x130] sm:$0xff]  ;;  %v628_v3 = vld [vmem:[#allocation2 + $0x1c0] sm:$0xff]  ;;  %v459_v4 = vld [vmem:[#allocation2 + $0x128] sm:$0xff] }
  0x21   :  { %1342 = vmatprep.subr.mxu0 %v1631_v0  ;;  %1381 = vmatprep.subr.mxu1 %v1631_v0  ;;  %v627_v5 = vld [vmem:[#allocation2 + $0x1b8] sm:$0xff]  ;;  %v458_v6 = vld [vmem:[#allocation2 + $0x120] sm:$0xff]  ;;  %v626_v7 = vld [vmem:[#allocation2 + $0x1b0] sm:$0xff] }
  0x22   :  { %1343 = vmatpush3.msra.mxu0 %v228_v18  ;;  %1382 = vmatpush3.msra.mxu1 %v131_v19  ;;  %v457_v8 = vld [vmem:[#allocation2 + $0x118] sm:$0xff]  ;;  %v625_v9 = vld [vmem:[#allocation2 + $0x1a8] sm:$0xff]  ;;  %v456_v10 = vld [vmem:[#allocation2 + $0x110] sm:$0xff] }
  0x23   :  { %1344 = vmatprep.subr.mxu0 %v1631_v0  ;;  %1383 = vmatprep.subr.mxu1 %v1631_v0  ;;  %v624_v11 = vld [vmem:[#allocation2 + $0x1a0] sm:$0xff]  ;;  %v455_v12 = vld [vmem:[#allocation2 + $0x108] sm:$0xff]  ;;  %v623_v13 = vld [vmem:[#allocation2 + $0x198] sm:$0xff] }
  0x24   :  { %1345 = vmatpush3.msra.mxu0 %v227_v20  ;;  %1384 = vmatpush3.msra.mxu1 %v130_v21  ;;  %v454_v14 = vld [vmem:[#allocation2 + $0x100] sm:$0xff]  ;;  %v622_v15 = vld [vmem:[#allocation2 + $0x190] sm:$0xff]  ;;  %v621_v16 = vld [vmem:[#allocation2 + $0x188] sm:$0xff] }
  0x25   :  { %1346 = vmatprep.subr.mxu0 %v1631_v0  ;;  %1385 = vmatprep.subr.mxu1 %v1631_v0  ;;  %v620_v17 = vld [vmem:[#allocation2 + $0x180] sm:$0xff] }
  0x26   :  { %1347 = vmatpush3.msra.mxu0 %v226_v22  ;;  %1386 = vmatpush3.msra.mxu1 %v129_v23  ;;  %v1179_v23 = vld [vmem:[%s1949_s2 + $0x2] ss:$0 sm:$0xff] }
  0x27   :  { %1348 = vmatprep.subr.mxu0 %v1631_v0  ;;  %1387 = vmatprep.subr.mxu1 %v1631_v0 }
  0x28   :  { %1349 = vmatpush3.msra.mxu0 %v225_v24  ;;  %1388 = vmatpush3.msra.mxu1 %v128_v25 }
  0x29   :  { %1350 = vmatprep.subr.mxu0 %v1631_v0  ;;  %1389 = vmatprep.subr.mxu1 %v1631_v0 }
  0x2a   :  { %1351 = vmatpush3.msra.mxu0 %v224_v26  ;;  %1390 = vmatpush3.msra.mxu1 %v127_v27  ;;  %v1181_v27 = vld [vmem:[%s1949_s2 + $0x3] ss:$0 sm:$0xff] }
  0x2b   :  { %1352 = vmatprep.subr.mxu0 %v1631_v0  ;;  %1391 = vmatprep.subr.mxu1 %v1631_v0 }
  0x2c   :  { %1362 = vmatprep.mubr.msk.f32.mxu0 %vm1632_vm0, %v1631_v0  ;;  %1353 = vmatpush3.msra.mxu0 %v223_v28 }
  0x2d   :  { %1392 = vmatpush3.msra.mxu1 %v126_v29  ;;  %1354 = vmatprep.subr.mxu0 %v1631_v0  ;;  %v801_v29 = vld [vmem:[#allocation2 + $0x278] sm:$0xff] }
  0x2e   :  { %1393 = vmatprep.subr.mxu1 %v1631_v0  ;;  %1355 = vmatpush3.msra.mxu0 %v222_v30 }
  0x2f   :  { %1394 = vmatpush3.msra.mxu1 %v125_v31  ;;  %1356 = vmatprep.subr.mxu0 %v1631_v0 }
  0x30   :  { %1395 = vmatprep.subr.mxu1 %v1631_v0  ;;  %1357 = vmatpush3.msra.mxu0 %v221_v32  ;;  %v800_v32 = vld [vmem:[#allocation2 + $0x270] sm:$0xff] }
  0x31   :  { %1396 = vmatpush3.msra.mxu1 %v124_v33  ;;  %1358 = vmatprep.subr.mxu0 %v1631_v0 }
  0x32   :  { %1405 = vmatprep.subr.mxu1 %v1631_v0  ;;  %1359 = vmatpush3.msra.mxu0 %v220_v34 }
  0x33   :  { %1360 = vmatprep.subr.mxu0 %v1631_v0 }
  0x34   :  { %1361 = vmatpush3.msra.mxu0 %v219_v35  ;;  %v707_v35 = vld [vmem:[%s1948_s1 + $0x20] sm:$0xff] }
  0x35   :  { %1400 = vmatprep.subr.mxu0 %v1631_v0 }
  0xd1   :  { %v119_v37 = vpop.f32.mrf.mxu0 }
  0xd2   :  { %v120_v38 = vadd.f32 %v1175_v36, %v119_v37  ;;  %v799_v36 = vld [vmem:[#allocation2 + $0x268] sm:$0xff]  ;;  %v798_v37 = vld [vmem:[#allocation2 + $0x260] sm:$0xff] }
  0xd3   :  { %v1324_v39 = vpop.f32.mrf.mxu0 }
  0xd4   :  { %v123_v41 = vmax.f32 %v120_v38, 0.0  ;;  %v873_v38 = vld [vmem:[%s1948_s1 + $0x28] sm:$0xff]  ;;  %v797_v39 = vld [vmem:[#allocation2 + $0x258] sm:$0xff] }
  0xd5   :  { %v214_v43 = vpop.f32.mrf.mxu0 }
  0xd6   :  { %v215_v44 = vadd.f32 %v1177_v40, %v214_v43  ;;  %1398 = vmatmul.mubr.f32.vlgmr.msra.gmra.mxu1 %v123_v41  ;;  %v967_v40 = vld [vmem:[#allocation2 + $0x2f8] sm:$0xff]  ;;  %v796_v41 = vld [vmem:[#allocation2 + $0x250] sm:$0xff]  ;;  %v795_v43 = vld [vmem:[#allocation2 + $0x248] sm:$0xff] }
  0xd7   :  { %v1329_v46 = vpop.f32.mrf.mxu0  ;;  %1406 = vmatpush3.msra.mxu1 %v469_v42  ;;  %1437 = vmatprep.mubr.msk.f32.mxu1 %vm1632_vm0, %v1631_v0  ;;  %v966_v42 = vld [vmem:[#allocation2 + $0x2f0] sm:$0xff] }
  0xd8   :  { %v218_v47 = vmax.f32 %v215_v44, 0.0  ;;  %1407 = vmatprep.subr.mxu1 %v1631_v0  ;;  %v965_v44 = vld [vmem:[#allocation2 + $0x2e8] sm:$0xff]  ;;  %v964_v46 = vld [vmem:[#allocation2 + $0x2e0] sm:$0xff] }
  0xd9   :  { %1408 = vmatpush3.msra.mxu1 %v468_v45  ;;  %v794_v45 = vld [vmem:[#allocation2 + $0x240] sm:$0xff] }
  0xda   :  { %1363 = vmatmul.mubr.f32.vlgmr.msra.gmra.mxu0 %v218_v47  ;;  %1409 = vmatprep.subr.mxu1 %v1631_v0  ;;  %v963_v47 = vld [vmem:[#allocation2 + $0x2d8] sm:$0xff] }
  0xdb   :  { %1401 = vmatpush3.msra.mxu0 %v375_v48  ;;  %1402 = vmatprep.mubr.msk.f32.mxu0 %vm1632_vm0, %v1631_v0  ;;  %v962_v48 = vld [vmem:[#allocation2 + $0x2d0] sm:$0xff] }
  0xdc   :  { %1440 = vmatprep.subr.mxu0 %v1631_v0  ;;  %1410 = vmatpush3.msra.mxu1 %v467_v49  ;;  %v961_v49 = vld [vmem:[#allocation2 + $0x2c8] sm:$0xff] }
  0xdd   :  { %1411 = vmatprep.subr.mxu1 %v1631_v0 }
  0xde   :  { %1403 = vmatmul.mubr.msk.f32.vlgmr.msra.gmra.mxu0 %vm49_vm1, %v1688_v2  ;;  %1412 = vmatpush3.msra.mxu1 %v466_v50  ;;  %v792_v50 = vld [vmem:[#allocation2 + $0x230] sm:$0xff] }
  0xdf   :  { %1441 = vmatpush3.msra.mxu0 %v541_v51  ;;  %1442 = vmatprep.mubr.msk.f32.mxu0 %vm1632_vm0, %v1631_v0  ;;  %v960_v51 = vld [vmem:[#allocation2 + $0x2c0] sm:$0xff] }
  0xe0   :  { %1445 = vmatprep.subr.mxu0 %v1631_v0  ;;  %1413 = vmatprep.subr.mxu1 %v1631_v0 }
  0xe1   :  { %1414 = vmatpush3.msra.mxu1 %v465_v52  ;;  %v791_v52 = vld [vmem:[#allocation2 + $0x228] sm:$0xff] }
  0xe2   :  { %1443 = vmatmul.mubr.msk.f32.vlgmr.msra.gmra.mxu0 %vm49_vm1, %v1688_v2  ;;  %1415 = vmatprep.subr.mxu1 %v1631_v0 }
  0xe3   :  { %1446 = vmatpush3.msra.mxu0 %v635_v53  ;;  %1416 = vmatpush3.msra.mxu1 %v464_v54  ;;  %v959_v53 = vld [vmem:[#allocation2 + $0x2b8] sm:$0xff]  ;;  %v790_v54 = vld [vmem:[#allocation2 + $0x220] sm:$0xff] }
  0xe4   :  { %1447 = vmatprep.subr.mxu0 %v1631_v0  ;;  %1417 = vmatprep.subr.mxu1 %v1631_v0 }
  0xe5   :  { %1448 = vmatpush3.msra.mxu0 %v634_v55  ;;  %1418 = vmatpush3.msra.mxu1 %v463_v56  ;;  %v958_v55 = vld [vmem:[#allocation2 + $0x2b0] sm:$0xff]  ;;  %v789_v56 = vld [vmem:[#allocation2 + $0x218] sm:$0xff] }
  0xe6   :  { %1449 = vmatprep.subr.mxu0 %v1631_v0  ;;  %1419 = vmatprep.subr.mxu1 %v1631_v0 }
  0xe7   :  { %1450 = vmatpush3.msra.mxu0 %v633_v57  ;;  %1420 = vmatpush3.msra.mxu1 %v462_v58  ;;  %v957_v57 = vld [vmem:[#allocation2 + $0x2a8] sm:$0xff]  ;;  %v788_v58 = vld [vmem:[#allocation2 + $0x210] sm:$0xff] }
  0xe8   :  { %1451 = vmatprep.subr.mxu0 %v1631_v0  ;;  %1421 = vmatprep.subr.mxu1 %v1631_v0 }
  0xe9   :  { %1452 = vmatpush3.msra.mxu0 %v632_v59  ;;  %1422 = vmatpush3.msra.mxu1 %v461_v60  ;;  %v956_v59 = vld [vmem:[#allocation2 + $0x2a0] sm:$0xff]  ;;  %v787_v60 = vld [vmem:[#allocation2 + $0x208] sm:$0xff] }
  0xea   :  { %1453 = vmatprep.subr.mxu0 %v1631_v0  ;;  %1423 = vmatprep.subr.mxu1 %v1631_v0 }
  0xeb   :  { %1454 = vmatpush3.msra.mxu0 %v631_v61  ;;  %1477 = vmatprep.mubr.msk.f32.mxu0 %vm1632_vm0, %v1631_v0  ;;  %v955_v61 = vld [vmem:[#allocation2 + $0x298] sm:$0xff] }
  0xec   :  { %1455 = vmatprep.subr.mxu0 %v1631_v0  ;;  %1424 = vmatpush3.msra.mxu1 %v460_v1  ;;  %v953_v1 = vld [vmem:[#allocation2 + $0x288] sm:$0xff] }
  0xed   :  { %1456 = vmatpush3.msra.mxu0 %v630_v62  ;;  %1425 = vmatprep.subr.mxu1 %v1631_v0  ;;  %v786_v62 = vld [vmem:[#allocation2 + $0x200] sm:$0xff] }
  0xee   :  { %1457 = vmatprep.subr.mxu0 %v1631_v0  ;;  %1426 = vmatpush3.msra.mxu1 %v459_v4 }
  0xef   :  { %1458 = vmatpush3.msra.mxu0 %v629_v63  ;;  %1427 = vmatprep.subr.mxu1 %v1631_v0  ;;  %v954_v63 = vld [vmem:[#allocation2 + $0x290] sm:$0xff] }
  0xf0   :  { %1459 = vmatprep.subr.mxu0 %v1631_v0  ;;  %1428 = vmatpush3.msra.mxu1 %v458_v6 }
  0xf1   :  { %1460 = vmatpush3.msra.mxu0 %v628_v3  ;;  %1429 = vmatprep.subr.mxu1 %v1631_v0  ;;  %v952_v3 = vld [vmem:[#allocation2 + $0x280] sm:$0xff] }
  0xf2   :  { %1461 = vmatprep.subr.mxu0 %v1631_v0  ;;  %1430 = vmatpush3.msra.mxu1 %v457_v8 }
  0xf3   :  { %1462 = vmatpush3.msra.mxu0 %v627_v5  ;;  %1431 = vmatprep.subr.mxu1 %v1631_v0 }
  0xf4   :  { %1463 = vmatprep.subr.mxu0 %v1631_v0  ;;  %1432 = vmatpush3.msra.mxu1 %v456_v10  ;;  %v1183_v10 = vld [vmem:[%s1949_s2 + $0x4] ss:$0 sm:$0xff] }
  0xf5   :  { %1464 = vmatpush3.msra.mxu0 %v626_v7  ;;  %1433 = vmatprep.subr.mxu1 %v1631_v0 }
  0xf6   :  { %1465 = vmatprep.subr.mxu0 %v1631_v0  ;;  %1434 = vmatpush3.msra.mxu1 %v455_v12 }
  0xf7   :  { %1466 = vmatpush3.msra.mxu0 %v625_v9  ;;  %1435 = vmatprep.subr.mxu1 %v1631_v0 }
  0xf8   :  { %1467 = vmatprep.subr.mxu0 %v1631_v0  ;;  %1436 = vmatpush3.msra.mxu1 %v454_v14  ;;  %v1185_v14 = vld [vmem:[%s1949_s2 + $0x5] ss:$0 sm:$0xff] }
  0xf9   :  { %1468 = vmatpush3.msra.mxu0 %v624_v11  ;;  %1485 = vmatprep.subr.mxu1 %v1631_v0 }
  0xfa   :  { %1469 = vmatprep.subr.mxu0 %v1631_v0 }
  0xfb   :  { %1470 = vmatpush3.msra.mxu0 %v623_v13 }
  0xfc   :  { %1471 = vmatprep.subr.mxu0 %v1631_v0 }
  0xfd   :  { %1472 = vmatpush3.msra.mxu0 %v622_v15 }
  0xfe   :  { %1473 = vmatprep.subr.mxu0 %v1631_v0 }
  0xff   :  { %1474 = vmatpush3.msra.mxu0 %v621_v16  ;;  %v1063_v16 = vld [vmem:[%s1952_s5 + $0x78] sm:$0xff] }
 0x100   :  { %1475 = vmatprep.subr.mxu0 %v1631_v0 }
 0x101   :  { %1476 = vmatpush3.msra.mxu0 %v620_v17 }
 0x102   :  { %1480 = vmatprep.subr.mxu0 %v1631_v0 }
 0x196   :  { %v371_v18 = vpop.f32.mrf.mxu1 }
 0x198   :  { %v1399_v19 = vpop.f32.mrf.mxu1 }
 0x199   :  { %v1062_v19 = vld [vmem:[%s1952_s5 + $0x70] sm:$0xff] }
 0x19a   :  { %v301_v20 = vpop.f32.mrf.mxu0 }
 0x19b   :  { %v1793_v21 = vadd.f32 %v371_v18, %v301_v20 }
 0x19c   :  { %v1364_v22 = vpop.f32.mrf.mxu0 }
 0x19d   :  { %v1061_v22 = vld [vmem:[%s1952_s5 + $0x68] sm:$0xff] }
 0x19e   :  { %v449_v24 = vpop.f32.mrf.mxu0 }
 0x19f   :  { %v450_v25 = vadd.f32 %v1179_v23, %v449_v24  ;;  %v1060_v23 = vld [vmem:[%s1952_s5 + $0x60] sm:$0xff]  ;;  %v1059_v24 = vld [vmem:[%s1952_s5 + $0x58] sm:$0xff] }
 0x1a0   :  { %v1404_v26 = vpop.f32.mrf.mxu0 }
 0x1a1   :  { %v453_v28 = vmax.f32 %v450_v25, 0.0  ;;  %v1058_v25 = vld [vmem:[%s1952_s5 + $0x50] sm:$0xff]  ;;  %v1057_v26 = vld [vmem:[%s1952_s5 + $0x48] sm:$0xff] }
 0x1a2   :  { %v615_v30 = vpop.f32.mrf.mxu0 }
 0x1a3   :  { %v616_v31 = vadd.f32 %v1181_v27, %v615_v30  ;;  %1438 = vmatmul.mubr.f32.vlgmr.msra.gmra.mxu1 %v453_v28  ;;  %v1056_v27 = vld [vmem:[%s1952_s5 + $0x40] sm:$0xff]  ;;  %v1055_v28 = vld [vmem:[%s1952_s5 + $0x38] sm:$0xff]  ;;  %v1053_v30 = vld [vmem:[%s1952_s5 + $0x28] sm:$0xff] }
 0x1a4   :  { %v1444_v33 = vpop.f32.mrf.mxu0  ;;  %1486 = vmatpush3.msra.mxu1 %v801_v29  ;;  %1517 = vmatprep.mubr.msk.f32.mxu1 %vm1632_vm0, %v1631_v0  ;;  %v1054_v29 = vld [vmem:[%s1952_s5 + $0x30] sm:$0xff] }
 0x1a5   :  { %v619_v34 = vmax.f32 %v616_v31, 0.0  ;;  %1487 = vmatprep.subr.mxu1 %v1631_v0  ;;  %v1052_v31 = vld [vmem:[%s1952_s5 + $0x20] sm:$0xff]  ;;  %v1050_v33 = vld [vmem:[%s1952_s5 + $0x10] sm:$0xff] }
 0x1a6   :  { %1488 = vmatpush3.msra.mxu1 %v800_v32  ;;  %v1051_v32 = vld [vmem:[%s1952_s5 + $0x18] sm:$0xff] }
 0x1a7   :  { %1478 = vmatmul.mubr.f32.vlgmr.msra.gmra.mxu0 %v619_v34  ;;  %1489 = vmatprep.subr.mxu1 %v1631_v0  ;;  %v1049_v34 = vld [vmem:[%s1952_s5 + $0x8] sm:$0xff] }
 0x1a8   :  { %1481 = vmatpush3.msra.mxu0 %v707_v35  ;;  %1482 = vmatprep.mubr.msk.f32.mxu0 %vm1632_vm0, %v1631_v0  ;;  %v1048_v35 = vld [vmem:[%s1952_s5] sm:$0xff] }
 0x1a9   :  { %1520 = vmatprep.subr.mxu0 %v1631_v0  ;;  %1490 = vmatpush3.msra.mxu1 %v799_v36 }
 0x1aa   :  { %1491 = vmatprep.subr.mxu1 %v1631_v0 }
 0x1ab   :  { %1483 = vmatmul.mubr.msk.f32.vlgmr.msra.gmra.mxu0 %vm49_vm1, %v1688_v2  ;;  %1492 = vmatpush3.msra.mxu1 %v798_v37 }
 0x1ac   :  { %1521 = vmatpush3.msra.mxu0 %v873_v38  ;;  %1522 = vmatprep.mubr.msk.f32.mxu0 %vm1632_vm0, %v1631_v0 }
 0x1ad   :  { %1525 = vmatprep.subr.mxu0 %v1631_v0  ;;  %1493 = vmatprep.subr.mxu1 %v1631_v0 }
 0x1ae   :  { %1494 = vmatpush3.msra.mxu1 %v797_v39 }
 0x1af   :  { %1523 = vmatmul.mubr.msk.f32.vlgmr.msra.gmra.mxu0 %vm49_vm1, %v1688_v2  ;;  %1495 = vmatprep.subr.mxu1 %v1631_v0  ;;  %v793_v2 = vld [vmem:[#allocation2 + $0x238] sm:$0xff] }
 0x1b0   :  { %1526 = vmatpush3.msra.mxu0 %v967_v40  ;;  %1496 = vmatpush3.msra.mxu1 %v796_v41  ;;  %v1187_v40 = vld [vmem:[%s1951_s4] ss:$0 sm:$0xff] }
 0x1b1   :  { %1527 = vmatprep.subr.mxu0 %v1631_v0  ;;  %1497 = vmatprep.subr.mxu1 %v1631_v0 }
 0x1b2   :  { %1528 = vmatpush3.msra.mxu0 %v966_v42  ;;  %1498 = vmatpush3.msra.mxu1 %v795_v43 }
 0x1b3   :  { %1529 = vmatprep.subr.mxu0 %v1631_v0  ;;  %1499 = vmatprep.subr.mxu1 %v1631_v0 }
 0x1b4   :  { %1530 = vmatpush3.msra.mxu0 %v965_v44  ;;  %1500 = vmatpush3.msra.mxu1 %v794_v45 }
 0x1b5   :  { %1531 = vmatprep.subr.mxu0 %v1631_v0  ;;  %1501 = vmatprep.subr.mxu1 %v1631_v0 }
 0x1b6   :  { %1532 = vmatpush3.msra.mxu0 %v964_v46  ;;  %1502 = vmatpush3.msra.mxu1 %v793_v2  ;;  %v1188_v46 = vld [vmem:[%s1953_s6] ss:$0 sm:$0xff] }
 0x1b7   :  { %1533 = vmatprep.subr.mxu0 %v1631_v0  ;;  %1503 = vmatprep.subr.mxu1 %v1631_v0 }
 0x1b8   :  { %1534 = vmatpush3.msra.mxu0 %v963_v47  ;;  %1557 = vmatprep.mubr.msk.f32.mxu0 %vm1632_vm0, %v1631_v0 }
 0x1b9   :  { %1535 = vmatprep.subr.mxu0 %v1631_v0  ;;  %1504 = vmatpush3.msra.mxu1 %v792_v50 }
 0x1ba   :  { %1536 = vmatpush3.msra.mxu0 %v962_v48  ;;  %1505 = vmatprep.subr.mxu1 %v1631_v0 }
 0x1bb   :  { %1537 = vmatprep.subr.mxu0 %v1631_v0  ;;  %1506 = vmatpush3.msra.mxu1 %v791_v52 }
 0x1bc   :  { %1538 = vmatpush3.msra.mxu0 %v961_v49  ;;  %1507 = vmatprep.subr.mxu1 %v1631_v0 }
 0x1bd   :  { %1539 = vmatprep.subr.mxu0 %v1631_v0  ;;  %1508 = vmatpush3.msra.mxu1 %v790_v54 }
 0x1be   :  { %1540 = vmatpush3.msra.mxu0 %v960_v51  ;;  %1509 = vmatprep.subr.mxu1 %v1631_v0 }
 0x1bf   :  { %1541 = vmatprep.subr.mxu0 %v1631_v0  ;;  %1510 = vmatpush3.msra.mxu1 %v789_v56 }
 0x1c0   :  { %1542 = vmatpush3.msra.mxu0 %v959_v53  ;;  %1511 = vmatprep.subr.mxu1 %v1631_v0 }
 0x1c1   :  { %1543 = vmatprep.subr.mxu0 %v1631_v0  ;;  %1512 = vmatpush3.msra.mxu1 %v788_v58 }
 0x1c2   :  { %1544 = vmatpush3.msra.mxu0 %v958_v55  ;;  %1513 = vmatprep.subr.mxu1 %v1631_v0 }
 0x1c3   :  { %1545 = vmatprep.subr.mxu0 %v1631_v0  ;;  %1514 = vmatpush3.msra.mxu1 %v787_v60 }
 0x1c4   :  { %1546 = vmatpush3.msra.mxu0 %v957_v57  ;;  %1515 = vmatprep.subr.mxu1 %v1631_v0 }
 0x1c5   :  { %1547 = vmatprep.subr.mxu0 %v1631_v0  ;;  %1516 = vmatpush3.msra.mxu1 %v786_v62 }
 0x1c6   :  { %1548 = vmatpush3.msra.mxu0 %v956_v59  ;;  %1560 = vmatprep.subr.mxu1 %v1631_v0 }
 0x1c7   :  { %1549 = vmatprep.subr.mxu0 %v1631_v0 }
 0x1c8   :  { %1550 = vmatpush3.msra.mxu0 %v955_v61 }
 0x1c9   :  { %1551 = vmatprep.subr.mxu0 %v1631_v0 }
 0x1ca   :  { %1552 = vmatpush3.msra.mxu0 %v954_v63 }
 0x1cb   :  { %1553 = vmatprep.subr.mxu0 %v1631_v0 }
 0x1cc   :  { %1554 = vmatpush3.msra.mxu0 %v953_v1 }
 0x1cd   :  { %1555 = vmatprep.subr.mxu0 %v1631_v0 }
 0x1ce   :  { %1556 = vmatpush3.msra.mxu0 %v952_v3 }
 0x263   :  { %v536_v4 = vpop.f32.mrf.mxu1 }
 0x264   :  { %v540_v5 = vadd.f32 %v536_v4, %v1793_v21 }
 0x265   :  { %v1439_v6 = vpop.f32.mrf.mxu1 }
 0x267   :  { %v702_v7 = vpop.f32.mrf.mxu0 }
 0x268   :  { %v1853_v8 = vadd.f32 %v702_v7, %v540_v5 }
 0x269   :  { %v1479_v9 = vpop.f32.mrf.mxu0 }
 0x26b   :  { %v781_v11 = vpop.f32.mrf.mxu0 }
 0x26c   :  { %v782_v12 = vadd.f32 %v1183_v10, %v781_v11 }
 0x26d   :  { %v1484_v13 = vpop.f32.mrf.mxu0 }
 0x26e   :  { %v785_v15 = vmax.f32 %v782_v12, 0.0 }
 0x26f   :  { %v947_v17 = vpop.f32.mrf.mxu0 }
 0x270   :  { %v948_v18 = vadd.f32 %v1185_v14, %v947_v17  ;;  %1518 = vmatmul.mubr.f32.vlgmr.msra.gmra.mxu1 %v785_v15 }
 0x271   :  { %v1524_v20 = vpop.f32.mrf.mxu0  ;;  %1561 = vmatpush3.msra.mxu1 %v1063_v16  ;;  %1592 = vmatprep.mubr.msk.f32.mxu1 %vm1632_vm0, %v1631_v0 }
 0x272   :  { %v951_v21 = vmax.f32 %v948_v18, 0.0  ;;  %1562 = vmatprep.subr.mxu1 %v1631_v0 }
 0x273   :  { %1563 = vmatpush3.msra.mxu1 %v1062_v19 }
 0x274   :  { %1558 = vmatmul.mubr.f32.vlgmr.msra.gmra.mxu0 %v951_v21  ;;  %1564 = vmatprep.subr.mxu1 %v1631_v0 }
 0x275   :  { %1565 = vmatpush3.msra.mxu1 %v1061_v22 }
 0x276   :  { %1566 = vmatprep.subr.mxu1 %v1631_v0 }
 0x277   :  { %1567 = vmatpush3.msra.mxu1 %v1060_v23 }
 0x278   :  { %1568 = vmatprep.subr.mxu1 %v1631_v0 }
 0x279   :  { %1569 = vmatpush3.msra.mxu1 %v1059_v24 }
 0x27a   :  { %1570 = vmatprep.subr.mxu1 %v1631_v0 }
 0x27b   :  { %1571 = vmatpush3.msra.mxu1 %v1058_v25 }
 0x27c   :  { %1572 = vmatprep.subr.mxu1 %v1631_v0 }
 0x27d   :  { %1573 = vmatpush3.msra.mxu1 %v1057_v26 }
 0x27e   :  { %1574 = vmatprep.subr.mxu1 %v1631_v0 }
 0x27f   :  { %1575 = vmatpush3.msra.mxu1 %v1056_v27 }
 0x280   :  { %1576 = vmatprep.subr.mxu1 %v1631_v0 }
 0x281   :  { %1577 = vmatpush3.msra.mxu1 %v1055_v28 }
 0x282   :  { %1578 = vmatprep.subr.mxu1 %v1631_v0 }
 0x283   :  { %1579 = vmatpush3.msra.mxu1 %v1054_v29 }
 0x284   :  { %1580 = vmatprep.subr.mxu1 %v1631_v0 }
 0x285   :  { %1581 = vmatpush3.msra.mxu1 %v1053_v30 }
 0x286   :  { %1582 = vmatprep.subr.mxu1 %v1631_v0 }
 0x287   :  { %1583 = vmatpush3.msra.mxu1 %v1052_v31 }
 0x288   :  { %1584 = vmatprep.subr.mxu1 %v1631_v0 }
 0x289   :  { %1585 = vmatpush3.msra.mxu1 %v1051_v32 }
 0x28a   :  { %1586 = vmatprep.subr.mxu1 %v1631_v0 }
 0x28b   :  { %1587 = vmatpush3.msra.mxu1 %v1050_v33 }
 0x28c   :  { %1588 = vmatprep.subr.mxu1 %v1631_v0 }
 0x28d   :  { %1589 = vmatpush3.msra.mxu1 %v1049_v34 }
 0x28e   :  { %1590 = vmatprep.subr.mxu1 %v1631_v0  ;;  %v1141_v0 = vlaneseq }
 0x28f   :  { %1591 = vmatpush3.msra.mxu1 %v1048_v35 }
 0x290   :  { %v1142_v45 = vand.u32 127, %v1141_v0 }
 0x292   :  { %vm1143_vm2 = vcmp.lt.s32.totalorder %v1142_v45, 5 }
 0x330   :  { %v868_v36 = vpop.f32.mrf.mxu1 }
 0x331   :  { %v872_v38 = vadd.f32 %v868_v36, %v1853_v8 }
 0x332   :  { %v1519_v37 = vpop.f32.mrf.mxu1 }
 0x334   :  { %v1034_v39 = vpop.f32.mrf.mxu0 }
 0x335   :  { %v1038_v41 = vadd.f32 %v1034_v39, %v872_v38 }
 0x336   :  { %v1559_v42 = vpop.f32.mrf.mxu0 }
 0x337   :  { %v1046_v43 = vadd.f32 %v1187_v40, %v1038_v41 }
 0x339   :  { %v1047_v44 = vmax.f32 %v1046_v43, 0.0 }
 0x33b   :  { %1593 = vmatmul.mubr.f32.vlgmr.msra.gmra.mxu1 %v1047_v44 }
 0x3fb   :  { %v1137_v2 = vpop.f32.mrf.mxu1 }
 0x3fc   :  { %v1138_v47 = vadd.f32 %v1188_v46, %v1137_v2 }
 0x3fd   :  { %v1594_v48 = vpop.f32.mrf.mxu1 }
 0x3fe   :  { %v1144_v49 = vsel %vm1143_vm2, %v1138_v47, -inf  ;;  %v1149_v51 = vsel %vm1143_vm2, -inf, %v1138_v47 }
 0x3ff   :  { %v1146_v50 = vsel %vm1145_vm3, %v1144_v49, -inf  ;;  %v1150_v52 = vsel %vm1145_vm3, %v1149_v51, -inf }
 0x400   :  { %1147 = vmax.xlane.f32.xlu0 %v1146_v50 }
 0x404   :  { %1151 = vmax.xlane.f32.xlu0 %v1150_v52 }
 0x489   :  { %v1148_v53 = vpop.xlane.xlu0 %1147 }
 0x48d   :  { %v1152_v54 = vpop.xlane.xlu0 %1151 }
 0x48e   :  { %v1153_v55 = vsel %vm1143_vm2, %v1148_v53, %v1152_v54 }
 0x48f   :  { %v1154_v56 = vsub.f32 %v1138_v47, %v1153_v55 }
 0x491   :  { %v1155_v57 = vmul.f32 1.442695, %v1154_v56 }
 0x493   :  { %1600 = vpow2.f32 %v1155_v57 }
 0x4a0   :  { %v1601_v58 = vpop.eup %1600 }
 0x4a1   :  { %v1157_v59 = vsel %vm1143_vm2, %v1601_v58, 0.0  ;;  %v1161_v61 = vsel %vm1143_vm2, 0.0, %v1601_v58 }
 0x4a2   :  { %v1158_v60 = vsel %vm1145_vm3, %v1157_v59, 0.0  ;;  %v1162_v62 = vsel %vm1145_vm3, %v1161_v61, 0.0 }
 0x4a3   :  { %1159 = vadd.xlane.f32.xlu1 %v1158_v60 }
 0x4a7   :  { %1163 = vadd.xlane.f32.xlu1 %v1162_v62 }
 0x52c   :  { %v1160_v63 = vpop.xlane.xlu1 %1159 }
 0x52d   :  { %1602 = vrcp.f32 %v1160_v63 }
 0x530   :  { %v1164_v1 = vpop.xlane.xlu1 %1163 }
 0x531   :  { %1604 = vrcp.f32 %v1164_v1 }
 0x53a   :  { %v1603_v3 = vpop.eup %1602 }
 0x53e   :  { %v1605_v4 = vpop.eup %1604 }
 0x53f   :  { %v1167_v5 = vsel %vm1143_vm2, %v1603_v3, %v1605_v4 }
 0x540   :  { %v1168_v6 = vmul.f32 %v1601_v58, %v1167_v5 }
 0x542   :  { %1169 = vst.msk [vmem:[%s1954_s7] sm:$0xff] %vm1145_vm3, %v1168_v6 }
 0x543   :  { %1174 = vsyncpa [#allocation3], 1 }

</bundles_post_ra>
